<compile_context>
chip_gen: v5e
topology: v5e:2x2
jax: 0.10.0
libtpu: 0.0.40
codegen_flags: <defaults>
</compile_context>

<pallas_src>
import functools

import jax
import jax.numpy as jnp
from jax.experimental import pallas as pl
from jax.experimental.pallas import tpu as pltpu


def _round_up(x, m):
    return (x + m - 1) // m * m


def _conv_rows(x_ref, w_ref, *, K, Ho, stride):
    """One image's conv as a single MXU contraction.

    x_ref block: (1, Hp, Wl)        bf16 (padded image; W and Cin flattened + lane-padded)
    w_ref      : (K*Wl, Wo*Cout)    bf16 (Toeplitz-expanded weights, VMEM-resident)
    returns    : (Ho, Wo*Cout)      f32
    """
    xp = x_ref[0]                                          # (Hp, Wl) bf16
    span = (Ho - 1) * stride + 1
    # K leading-axis slices, concatenated along 128-aligned lanes -> (Ho, K*Wl).
    lhs = jnp.concatenate(
        [xp[ky:ky + span:stride, :] for ky in range(K)], axis=1)
    return jnp.dot(lhs, w_ref[...], preferred_element_type=jnp.float32)


def _conv_stats_kernel(x_ref, w_ref, y_ref, stats_ref, *, K, Ho, stride):
    # Pass 1: conv once per image; emit the dense conv result AND per-lane partial
    # BN statistics (sum, sum of squares) over this image's output rows.
    y = _conv_rows(x_ref, w_ref, K=K, Ho=Ho, stride=stride)        # (Ho, Wo*Cout) f32
    y_ref[0] = y
    s1 = jnp.sum(y, axis=0, keepdims=True)                         # (1, Wo*Cout)
    s2 = jnp.sum(y * y, axis=0, keepdims=True)                     # (1, Wo*Cout)
    stats_ref[0] = jnp.concatenate([s1, s2], axis=0)               # (2, Wo*Cout)


def _bn_apply_kernel(y_ref, scale_ref, shift_ref, out_ref):
    # Pass 2: fused BN affine epilogue over the stored conv output, dense lane store.
    out_ref[0] = (y_ref[0] * scale_ref[...] + shift_ref[...]).astype(out_ref.dtype)


def cb_forward(x_nchw, weight_oihw, gamma, beta, *, kSize, stride=1, eps=1e-3):
    """Conv2d(nIn, nOut, kSize, stride, padding=(kSize-1)//2, bias=False) + BatchNorm2d.

    x_nchw:      (N, Cin, H, W)    f32
    weight_oihw: (Cout, Cin, K, K) f32  (PyTorch conv weight layout)
    gamma, beta: (Cout,)           f32
    returns:     (N, Cout, Ho, Wo) f32  (training-mode BatchNorm, batch statistics)
    """
    N, Cin, H, W = x_nchw.shape
    Cout = weight_oihw.shape[0]
    K = kSize
    pad = (K - 1) // 2
    Hp, Wp = H + 2 * pad, W + 2 * pad
    Ho = (H + 2 * pad - K) // stride + 1
    Wo = (W + 2 * pad - K) // stride + 1
    lane_in = Wp * Cin
    Wl = _round_up(lane_in, 128)            # lane-padded input row width
    WoCo = Wo * Cout                        # dense output lane width

    # ---- layout prep: one fused XLA pass over x (transpose+pad+pack+bf16 cast). ----
    # A channels-last end-to-end model would skip this and the final NCHW transpose.
    x_nhwc = jnp.transpose(x_nchw, (0, 2, 3, 1))
    x_pad = jnp.pad(x_nhwc, ((0, 0), (pad, pad), (pad, pad), (0, 0)))
    x_lane = x_pad.reshape(N, Hp, lane_in)
    x_lane = jnp.pad(x_lane, ((0, 0), (0, 0), (0, Wl - lane_in))).astype(jnp.bfloat16)

    # ---- Toeplitz-expanded weights: rhs[(ky,wp,ci),(w,co)] = W[ky, wp-w*s, ci, co]. ----
    w_kkio = jnp.transpose(weight_oihw, (2, 3, 1, 0)).astype(jnp.float32)   # (ky,kx,ci,co)
    sel = (jnp.arange(Wp)[None, :, None] ==
           (jnp.arange(Wo)[None, None, :] * stride + jnp.arange(K)[:, None, None])
           ).astype(jnp.float32)                                            # (kx, wp, w)
    rhs = jnp.einsum('xpw,yxco->ypcwo', sel, w_kkio)                        # (ky,wp,ci,w,co)
    rhs = rhs.reshape(K, lane_in, WoCo)
    rhs = jnp.pad(rhs, ((0, 0), (0, Wl - lane_in), (0, 0)))
    rhs = rhs.reshape(K * Wl, WoCo).astype(jnp.bfloat16)

    parallel = pltpu.CompilerParams(dimension_semantics=("parallel",))
    conv_flops = 2 * N * Ho * (K * Wl) * WoCo
    x_bytes = x_lane.size * 2
    w_bytes = rhs.size * 2
    y_bytes = N * Ho * WoCo * 4

    x_spec = pl.BlockSpec((1, Hp, Wl), lambda n: (n, 0, 0))
    w_spec = pl.BlockSpec((K * Wl, WoCo), lambda n: (0, 0))                 # resident
    y_spec = pl.BlockSpec((1, Ho, WoCo), lambda n: (n, 0, 0))

    # ---- pass 1: conv -> dense conv output + per-image (sum, sum_sq) stats. ----
    y_conv, stats = pl.pallas_call(
        functools.partial(_conv_stats_kernel, K=K, Ho=Ho, stride=stride),
        grid=(N,),
        in_specs=[x_spec, w_spec],
        out_specs=[y_spec,
                   pl.BlockSpec((1, 2, WoCo), lambda n: (n, 0, 0))],
        out_shape=(jax.ShapeDtypeStruct((N, Ho, WoCo), jnp.float32),
                   jax.ShapeDtypeStruct((N, 2, WoCo), jnp.float32)),
        compiler_params=parallel,
        cost_estimate=pl.CostEstimate(
            flops=conv_flops, transcendentals=0,
            bytes_accessed=x_bytes + w_bytes + y_bytes + N * 2 * WoCo * 4),
    )(x_lane, rhs)

    # ---- tiny reduction + per-channel BN affine coefficients (plain JAX). ----
    tot = jnp.sum(stats, axis=0).reshape(2, Wo, Cout).sum(axis=1)           # (2, Cout)
    count = N * Ho * Wo
    mean = tot[0] / count
    var = tot[1] / count - mean * mean               # biased variance (training-mode BN)
    inv = jax.lax.rsqrt(var + eps)
    scale_c = gamma.astype(jnp.float32) * inv
    shift_c = beta.astype(jnp.float32) - mean * scale_c
    scale = jnp.tile(scale_c, Wo).reshape(1, WoCo)   # lane order (w, co)
    shift = jnp.tile(shift_c, Wo).reshape(1, WoCo)

    # ---- pass 2: elementwise BN affine over the stored conv output (no recompute). ----
    y_dense = pl.pallas_call(
        _bn_apply_kernel,
        grid=(N,),
        in_specs=[y_spec,
                  pl.BlockSpec((1, WoCo), lambda n: (0, 0)),
                  pl.BlockSpec((1, WoCo), lambda n: (0, 0))],
        out_specs=y_spec,
        out_shape=jax.ShapeDtypeStruct((N, Ho, WoCo), jnp.float32),
        compiler_params=parallel,
        cost_estimate=pl.CostEstimate(
            flops=2 * N * Ho * WoCo, transcendentals=0,
            bytes_accessed=2 * y_bytes + 2 * WoCo * 4),
    )(y_conv, scale, shift)

    # ---- back to the module's NCHW interface (layout plumbing in the wrapper). ----
    out = y_dense.reshape(N, Ho, Wo, Cout)
    return jnp.transpose(out, (0, 3, 1, 2))


def _reference(x_nchw, weight_oihw, gamma, beta, *, stride, pad, eps):
    # Pure-JAX f32 reference for a correctness check.
    y = jax.lax.conv_general_dilated(
        x_nchw, weight_oihw, window_strides=(stride, stride),
        padding=((pad, pad), (pad, pad)),
        dimension_numbers=("NCHW", "OIHW", "NCHW"))
    mean = jnp.mean(y, axis=(0, 2, 3), keepdims=True)
    var = jnp.mean((y - mean) ** 2, axis=(0, 2, 3), keepdims=True)
    g = gamma.reshape(1, -1, 1, 1)
    b = beta.reshape(1, -1, 1, 1)
    return (y - mean) * jax.lax.rsqrt(var + eps) * g + b


if __name__ == "__main__":
    # CB(nIn=4, nOut=8, kSize=3, stride=1); input (N=2, C=4, H=16, W=16).
    nIn, nOut, kSize, stride = 4, 8, 3, 1
    N, H, W = 2, 16, 16
    eps = 1e-3  # CB uses nn.BatchNorm2d(nOut, eps=0.001)

    key = jax.random.PRNGKey(0)
    k_x, k_w, k_g, k_b = jax.random.split(key, 4)
    x = jax.random.normal(k_x, (N, nIn, H, W), dtype=jnp.float32)
    weight = 0.1 * jax.random.normal(k_w, (nOut, nIn, kSize, kSize), dtype=jnp.float32)
    gamma = 1.0 + 0.1 * jax.random.normal(k_g, (nOut,), dtype=jnp.float32)
    beta = 0.1 * jax.random.normal(k_b, (nOut,), dtype=jnp.float32)

    fwd = jax.jit(lambda xx, ww, gg, bb: cb_forward(
        xx, ww, gg, bb, kSize=kSize, stride=stride, eps=eps))
    out = jax.block_until_ready(fwd(x, weight, gamma, beta))

    ref = _reference(x, weight, gamma, beta, stride=stride, pad=(kSize - 1) // 2, eps=eps)
    assert out.shape == (N, nOut, H, W)
    # The kernel feeds the MXU bf16 inputs (f32 accumulation); compare against the f32
    # reference with a bf16-appropriate tolerance.
    assert jnp.allclose(out, ref, atol=5e-2, rtol=5e-2), float(jnp.max(jnp.abs(out - ref)))
    print("KERNEL_OK")
</pallas_src>

<mosaic_0001>
module attributes {stable_mosaic.version = 11 : i64} {
  func.func @_conv_stats_kernel(%arg0: i32, %arg1: memref<1x18x128xbf16, #tpu.memory_space<vmem>>, %arg2: memref<384x128xbf16, #tpu.memory_space<vmem>>, %arg3: memref<1x16x128xf32, #tpu.memory_space<vmem>>, %arg4: memref<1x2x128xf32, #tpu.memory_space<vmem>>) attributes {dimension_semantics = [#tpu.dimension_semantics<parallel>], iteration_bounds = array<i64: 2>, scalar_prefetch = 0 : i64, scratch_operands = 0 : i64, tpu.core_type = #tpu.core_type<tc>, window_params = [{transform_indices = @transform_0, window_bounds = array<i64: 1, 18, 128>}, {pipeline_mode = #tpu.pipeline_mode<synchronous>, transform_indices = @transform_1, window_bounds = array<i64: 384, 128>}, {transform_indices = @transform_2, window_bounds = array<i64: 1, 16, 128>}, {transform_indices = @transform_3, window_bounds = array<i64: 1, 2, 128>}]} {
    %c0 = arith.constant 0 : index
    %c0_0 = arith.constant 0 : index
    %c0_1 = arith.constant 0 : index
    %0 = vector.load %arg1[%c0, %c0_0, %c0_1] : memref<1x18x128xbf16, #tpu.memory_space<vmem>>, vector<1x18x128xbf16>
    %1 = vector.shape_cast %0 : vector<1x18x128xbf16> to vector<18x128xbf16>
    %2 = vector.extract_strided_slice %1 {offsets = [0, 0], sizes = [16, 128], strides = [1, 1]} : vector<18x128xbf16> to vector<16x128xbf16>
    %3 = vector.extract_strided_slice %1 {offsets = [1, 0], sizes = [16, 128], strides = [1, 1]} : vector<18x128xbf16> to vector<16x128xbf16>
    %4 = vector.extract_strided_slice %1 {offsets = [2, 0], sizes = [16, 128], strides = [1, 1]} : vector<18x128xbf16> to vector<16x128xbf16>
    %5 = tpu.concatenate %2, %3, %4 in 1 : vector<16x128xbf16>, vector<16x128xbf16>, vector<16x128xbf16> -> vector<16x384xbf16>
    %c0_2 = arith.constant 0 : index
    %c0_3 = arith.constant 0 : index
    %6 = vector.load %arg2[%c0_2, %c0_3] : memref<384x128xbf16, #tpu.memory_space<vmem>>, vector<384x128xbf16>
    %cst = arith.constant dense<0.000000e+00> : vector<16x128xf32>
    %7 = tpu.matmul %5, %6, %cst {dimension_numbers = #tpu.dot_dimension_numbers<[1], [0], [0], [1], [0, 0, 1, 1], [], []>} : vector<16x384xbf16>, vector<384x128xbf16>, vector<16x128xf32> -> vector<16x128xf32>
    %c0_4 = arith.constant 0 : index
    %c0_5 = arith.constant 0 : index
    %c0_6 = arith.constant 0 : index
    %8 = vector.load %arg3[%c0_4, %c0_5, %c0_6] : memref<1x16x128xf32, #tpu.memory_space<vmem>>, vector<1x16x128xf32>
    %9 = vector.shape_cast %8 : vector<1x16x128xf32> to vector<16x128xf32>
    %10 = vector.shape_cast %7 : vector<16x128xf32> to vector<1x16x128xf32>
    tpu.vector_store %arg3[%c0_4, %c0_5, %c0_6], %10 {strides = array<i32>} : memref<1x16x128xf32, #tpu.memory_space<vmem>>, vector<1x16x128xf32>,
    %cst_7 = arith.constant dense<0.000000e+00> : vector<128xf32>
    %11 = vector.multi_reduction <add>, %7, %cst_7 [0] : vector<16x128xf32> to vector<128xf32>
    %12 = vector.shape_cast %11 : vector<128xf32> to vector<1x128xf32>
    %13 = arith.mulf %7, %7 : vector<16x128xf32>
    %cst_8 = arith.constant dense<0.000000e+00> : vector<128xf32>
    %14 = vector.multi_reduction <add>, %13, %cst_8 [0] : vector<16x128xf32> to vector<128xf32>
    %15 = vector.shape_cast %14 : vector<128xf32> to vector<1x128xf32>
    %16 = tpu.concatenate %12, %15 in 0 : vector<1x128xf32>, vector<1x128xf32> -> vector<2x128xf32>
    %c0_9 = arith.constant 0 : index
    %c0_10 = arith.constant 0 : index
    %c0_11 = arith.constant 0 : index
    %17 = vector.load %arg4[%c0_9, %c0_10, %c0_11] : memref<1x2x128xf32, #tpu.memory_space<vmem>>, vector<1x2x128xf32>
    %18 = vector.shape_cast %17 : vector<1x2x128xf32> to vector<2x128xf32>
    %19 = vector.shape_cast %16 : vector<2x128xf32> to vector<1x2x128xf32>
    tpu.vector_store %arg4[%c0_9, %c0_10, %c0_11], %19 {strides = array<i32>} : memref<1x2x128xf32, #tpu.memory_space<vmem>>, vector<1x2x128xf32>,
    return
  }
  func.func @transform_0(%arg0: i32) -> (i32, i32, i32) {
    %c0_i32 = arith.constant 0 : i32
    %c0_i32_0 = arith.constant 0 : i32
    %c0_i32_1 = arith.constant 0 : i32
    return %arg0, %c0_i32, %c0_i32_0 : i32, i32, i32
  }
  func.func @transform_1(%arg0: i32) -> (i32, i32) {
    %c0_i32 = arith.constant 0 : i32
    %c0_i32_0 = arith.constant 0 : i32
    %c0_i32_1 = arith.constant 0 : i32
    return %c0_i32, %c0_i32_0 : i32, i32
  }
  func.func @transform_2(%arg0: i32) -> (i32, i32, i32) {
    %c0_i32 = arith.constant 0 : i32
    %c0_i32_0 = arith.constant 0 : i32
    %c0_i32_1 = arith.constant 0 : i32
    return %arg0, %c0_i32, %c0_i32_0 : i32, i32, i32
  }
  func.func @transform_3(%arg0: i32) -> (i32, i32, i32) {
    %c0_i32 = arith.constant 0 : i32
    %c0_i32_0 = arith.constant 0 : i32
    %c0_i32_1 = arith.constant 0 : i32
    return %arg0, %c0_i32, %c0_i32_0 : i32, i32, i32
  }
}

module attributes {stable_mosaic.version = 11 : i64} {
  func.func @_bn_apply_kernel(%arg0: i32, %arg1: memref<1x16x128xf32, #tpu.memory_space<vmem>>, %arg2: memref<1x128xf32, #tpu.memory_space<vmem>>, %arg3: memref<1x128xf32, #tpu.memory_space<vmem>>, %arg4: memref<1x16x128xf32, #tpu.memory_space<vmem>>) attributes {dimension_semantics = [#tpu.dimension_semantics<parallel>], iteration_bounds = array<i64: 2>, scalar_prefetch = 0 : i64, scratch_operands = 0 : i64, tpu.core_type = #tpu.core_type<tc>, window_params = [{transform_indices = @transform_0, window_bounds = array<i64: 1, 16, 128>}, {pipeline_mode = #tpu.pipeline_mode<synchronous>, transform_indices = @transform_1, window_bounds = array<i64: 1, 128>}, {pipeline_mode = #tpu.pipeline_mode<synchronous>, transform_indices = @transform_2, window_bounds = array<i64: 1, 128>}, {transform_indices = @transform_3, window_bounds = array<i64: 1, 16, 128>}]} {
    %c0 = arith.constant 0 : index
    %c0_0 = arith.constant 0 : index
    %c0_1 = arith.constant 0 : index
    %0 = vector.load %arg1[%c0, %c0_0, %c0_1] : memref<1x16x128xf32, #tpu.memory_space<vmem>>, vector<1x16x128xf32>
    %1 = vector.shape_cast %0 : vector<1x16x128xf32> to vector<16x128xf32>
    %c0_2 = arith.constant 0 : index
    %c0_3 = arith.constant 0 : index
    %2 = vector.load %arg2[%c0_2, %c0_3] : memref<1x128xf32, #tpu.memory_space<vmem>>, vector<1x128xf32>
    %3 = vector.broadcast %2 : vector<1x128xf32> to vector<16x128xf32>
    %4 = arith.mulf %1, %3 : vector<16x128xf32>
    %c0_4 = arith.constant 0 : index
    %c0_5 = arith.constant 0 : index
    %5 = vector.load %arg3[%c0_4, %c0_5] : memref<1x128xf32, #tpu.memory_space<vmem>>, vector<1x128xf32>
    %6 = vector.broadcast %5 : vector<1x128xf32> to vector<16x128xf32>
    %7 = arith.addf %4, %6 : vector<16x128xf32>
    %c0_6 = arith.constant 0 : index
    %c0_7 = arith.constant 0 : index
    %c0_8 = arith.constant 0 : index
    %8 = vector.load %arg4[%c0_6, %c0_7, %c0_8] : memref<1x16x128xf32, #tpu.memory_space<vmem>>, vector<1x16x128xf32>
    %9 = vector.shape_cast %8 : vector<1x16x128xf32> to vector<16x128xf32>
    %10 = vector.shape_cast %7 : vector<16x128xf32> to vector<1x16x128xf32>
    tpu.vector_store %arg4[%c0_6, %c0_7, %c0_8], %10 {strides = array<i32>} : memref<1x16x128xf32, #tpu.memory_space<vmem>>, vector<1x16x128xf32>,
    return
  }
  func.func @transform_0(%arg0: i32) -> (i32, i32, i32) {
    %c0_i32 = arith.constant 0 : i32
    %c0_i32_0 = arith.constant 0 : i32
    %c0_i32_1 = arith.constant 0 : i32
    return %arg0, %c0_i32, %c0_i32_0 : i32, i32, i32
  }
  func.func @transform_1(%arg0: i32) -> (i32, i32) {
    %c0_i32 = arith.constant 0 : i32
    %c0_i32_0 = arith.constant 0 : i32
    %c0_i32_1 = arith.constant 0 : i32
    return %c0_i32, %c0_i32_0 : i32, i32
  }
  func.func @transform_2(%arg0: i32) -> (i32, i32) {
    %c0_i32 = arith.constant 0 : i32
    %c0_i32_0 = arith.constant 0 : i32
    %c0_i32_1 = arith.constant 0 : i32
    return %c0_i32, %c0_i32_0 : i32, i32
  }
  func.func @transform_3(%arg0: i32) -> (i32, i32, i32) {
    %c0_i32 = arith.constant 0 : i32
    %c0_i32_0 = arith.constant 0 : i32
    %c0_i32_1 = arith.constant 0 : i32
    return %arg0, %c0_i32, %c0_i32_0 : i32, i32, i32
  }
}

</mosaic_0001>

<bundles_post_ra>
// kernel: tile.13
= control target key start
LH: loop header
LB: loop body
LE: loop exit
PB: predicated region body
PF: predicated region fallthrough
CT: control target
= control target key end

     0   :  { %s28_s0 = inlined_call_operand.vmem [shape: f32[8], index: 0, kind: input, shape index: {}]   ;;  %s29_s1 = inlined_call_operand.vmem [shape: f32[16,8], index: 1, kind: output, shape index: {}]  }
   0x1   :  { %v4_v0 = vld [vmem:[%s28_s0] ss:$0 sm:$0xff] }
   0x2   :  { %5 = vst [vmem:[%s29_s1] sm:$0xff] %v4_v0 }
   0x3   :  { %8 = vst [vmem:[%s29_s1 + $0x8] sm:$0xff] %v4_v0 }

// kernel: tile.14
= control target key start
LH: loop header
LB: loop body
LE: loop exit
PB: predicated region body
PF: predicated region fallthrough
CT: control target
= control target key end

     0   :  { %s131_s10 = smov 120   ;;  %s132_s11 = smov 104   ;;  %vm3_vm0 = vcmask 64512   ;;  %vm9_vm1 = vcmask 1048512   ;;  %vm15_vm2 = vcmask 982912   ;;  %vm21_vm3 = vcmask 917312   ;;  %s207_s0 = inlined_call_operand.vmem [shape: f32[16,8], index: 0, kind: input, shape index: {}]   ;;  %s208_s1 = inlined_call_operand.vmem [shape: f32[1,128], index: 1, kind: output, shape index: {}]  }
   0x1   :  { %v101_v0 = vld [vmem:[%s207_s0 + $0xf] sm:$0x1]   ;;  %v103_v1 = vld [vmem:[%s207_s0 + $0xd] sm:$0x1]   ;;  %v105_v2 = vld [vmem:[%s207_s0 + $0xb] sm:$0x1]  }
   0x2   :  { %7 = vrot.lane.b32.xlu0 %v101_v0, %s131_s10  ;;  %19 = vrot.lane.b32.xlu1 %v103_v1, %s132_s11  ;;  %s133_s14 = smov 88   ;;  %v102_v3 = vld [vmem:[%s207_s0 + $0xe] sm:$0x1]   ;;  %v104_v4 = vld [vmem:[%s207_s0 + $0xc] sm:$0x1]   ;;  %s134_s19 = smov 112  }
   0x3   :  { %31 = vrot.lane.b32.xlu2 %v105_v2, %s133_s14  ;;  %s135_s20 = smov 96   ;;  %v106_v5 = vld [vmem:[%s207_s0 + $0xa] sm:$0x1]   ;;  %s136_s23 = smov 80   ;;  %v107_v6 = vld [vmem:[%s207_s0 + $0x9] sm:$0x1]  }
   0x4   :  { %v108_v7 = vld [vmem:[%s207_s0 + $0x8] sm:$0x1]   ;;  %s137_s28 = smov 72   ;;  %s138_s29 = smov 64   ;;  %v109_v8 = vld [vmem:[%s207_s0 + $0x7] sm:$0x1]  }
   0x5   :  { %s139_s3 = smov 56   ;;  %v110_v9 = vld [vmem:[%s207_s0 + $0x6] sm:$0x1]   ;;  %v111_v10 = vld [vmem:[%s207_s0 + $0x5] sm:$0x1]   ;;  %s140_s8 = smov 48  }
   0x6   :  { %s141_s9 = smov 40   ;;  %v112_v11 = vld [vmem:[%s207_s0 + $0x4] sm:$0x1]   ;;  %s142_s12 = smov 32   ;;  %v113_v12 = vld [vmem:[%s207_s0 + $0x3] sm:$0x1]  }
   0x7   :  { %v114_v13 = vld [vmem:[%s207_s0 + $0x2] sm:$0x1]   ;;  %s143_s17 = smov 24   ;;  %s144_s18 = smov 16   ;;  %v115_v14 = vld [vmem:[%s207_s0 + $0x1] sm:$0x1]  }
   0x8   :  { %s145_s21 = smov 8   ;;  %v2_v15 = vld [vmem:[%s207_s0] sm:$0x1]   ;;  %vm27_vm4 = vcmask 851712   ;;  %vm33_vm5 = vcmask 786112   ;;  %vm39_vm6 = vcmask 720512  }
   0x9   :  { %4 = vst.msk [vmem:[#allocation0] sm:$0x1] %vm3_vm0, %v2_v15   ;;  %vm45_vm7 = vcmask 654912   ;;  %vm51_vm8 = vcmask 589312   ;;  %vm57_vm9 = vcmask 523712   ;;  %vm63_vm10 = vcmask 458112  }
   0xa   :  { %13 = vrot.lane.b32.xlu0 %v102_v3, %s134_s19  ;;  %25 = vrot.lane.b32.xlu1 %v104_v4, %s135_s20  ;;  %vm69_vm11 = vcmask 392512   ;;  %vm75_vm12 = vcmask 326912   ;;  %vm81_vm13 = vcmask 261312   ;;  %vm87_vm14 = vcmask 195712  }
   0xb   :  { %37 = vrot.lane.b32.xlu2 %v106_v5, %s136_s23  ;;  %vm93_vm15 = vcmask 130112  }
  0x12   :  { %43 = vrot.lane.b32.xlu0 %v107_v6, %s137_s28  ;;  %49 = vrot.lane.b32.xlu1 %v108_v7, %s138_s29 }
  0x13   :  { %55 = vrot.lane.b32.xlu2 %v109_v8, %s139_s3 }
  0x1a   :  { %61 = vrot.lane.b32.xlu0 %v110_v9, %s140_s8  ;;  %67 = vrot.lane.b32.xlu1 %v111_v10, %s141_s9 }
  0x1b   :  { %73 = vrot.lane.b32.xlu2 %v112_v11, %s142_s12 }
  0x22   :  { %79 = vrot.lane.b32.xlu0 %v113_v12, %s143_s17  ;;  %85 = vrot.lane.b32.xlu1 %v114_v13, %s144_s18 }
  0x23   :  { %91 = vrot.lane.b32.xlu2 %v115_v14, %s145_s21 }
  0x5d   :  { %v32_v16 = vpop.permute.xlu2 %31  }
  0x65   :  { %v38_v17 = vpop.permute.xlu2 %37  }
  0x6d   :  { %v56_v18 = vpop.permute.xlu2 %55  }
  0x74   :  { %v8_v19 = vpop.permute.xlu0 %7   ;;  %v20_v20 = vpop.permute.xlu1 %19  }
  0x75   :  { %10 = vst.msk [vmem:[#allocation0] sm:$0x1] %vm9_vm1, %v8_v19   ;;  %v74_v21 = vpop.permute.xlu2 %73  }
  0x7c   :  { %v14_v22 = vpop.permute.xlu0 %13   ;;  %v26_v23 = vpop.permute.xlu1 %25  }
  0x7d   :  { %16 = vst.msk [vmem:[#allocation0] sm:$0x1] %vm15_vm2, %v14_v22   ;;  %v92_v24 = vpop.permute.xlu2 %91  }
  0x7e   :  { %22 = vst.msk [vmem:[#allocation0] sm:$0x1] %vm21_vm3, %v20_v20  }
  0x7f   :  { %28 = vst.msk [vmem:[#allocation0] sm:$0x1] %vm27_vm4, %v26_v23  }
  0x80   :  { %34 = vst.msk [vmem:[#allocation0] sm:$0x1] %vm33_vm5, %v32_v16  }
  0x81   :  { %40 = vst.msk [vmem:[#allocation0] sm:$0x1] %vm39_vm6, %v38_v17  }
  0x84   :  { %v44_v25 = vpop.permute.xlu0 %43   ;;  %v50_v26 = vpop.permute.xlu1 %49  }
  0x85   :  { %46 = vst.msk [vmem:[#allocation0] sm:$0x1] %vm45_vm7, %v44_v25  }
  0x86   :  { %52 = vst.msk [vmem:[#allocation0] sm:$0x1] %vm51_vm8, %v50_v26  }
  0x87   :  { %58 = vst.msk [vmem:[#allocation0] sm:$0x1] %vm57_vm9, %v56_v18  }
  0x8c   :  { %v62_v27 = vpop.permute.xlu0 %61   ;;  %v68_v28 = vpop.permute.xlu1 %67  }
  0x8d   :  { %64 = vst.msk [vmem:[#allocation0] sm:$0x1] %vm63_vm10, %v62_v27  }
  0x8e   :  { %70 = vst.msk [vmem:[#allocation0] sm:$0x1] %vm69_vm11, %v68_v28  }
  0x8f   :  { %76 = vst.msk [vmem:[#allocation0] sm:$0x1] %vm75_vm12, %v74_v21  }
  0x94   :  { %v80_v29 = vpop.permute.xlu0 %79   ;;  %v86_v30 = vpop.permute.xlu1 %85  }
  0x95   :  { %82 = vst.msk [vmem:[#allocation0] sm:$0x1] %vm81_vm13, %v80_v29  }
  0x96   :  { %88 = vst.msk [vmem:[#allocation0] sm:$0x1] %vm87_vm14, %v86_v30  }
  0x97   :  { %94 = vst.msk [vmem:[#allocation0] sm:$0x1] %vm93_vm15, %v92_v24  }
  0x9e   :  { %v97_v31 = vld [vmem:[#allocation0] sm:$0x1] }
  0x9f   :  { %100 = vst [vmem:[%s208_s1] sm:$0x1] %v97_v31 }

// kernel: _lambda_.2
= control target key start
LH: loop header
LB: loop body
LE: loop exit
PB: predicated region body
PF: predicated region fallthrough
CT: control target
= control target key end

     0   :  { %s728_s12 = smov 0   ;;  %s825_s0 = inlined_call_operand.vmem [shape: bf16[2,18,128], index: 0, kind: input, shape index: {}]   ;;  %s826_s1 = inlined_call_operand.vmem [shape: bf16[384,128], index: 1, kind: input, shape index: {}]   ;;  %s827_s2 = inlined_call_operand.vmem [shape: f32[2,16,128], index: 2, kind: output, shape index: {0}]   ;;  %s828_s3 = inlined_call_operand.vmem [shape: f32[2,2,128], index: 3, kind: output, shape index: {1}]  }
   0x1 LB: > { %s554_s13 = sadd.s32 4294967295, %s706_s12   ;;  %p558_p0 = scmp.ge.s32.totalorder %s706_s12, 1  ;;  %s706_s12 = sphi %s728_s12, %s14_s12  }
   0x2   : > { %p140_p1 = scmp.lt.s32.totalorder %s706_s12, 3 }
   0x4   : > { %p141_p2 = pnand %p558_p0, %p140_p1 }
   0x5   : > { %p168_p3 = scmp.lt.s32.totalorder (!%p141_p2), %s554_s13, 1 }
   0x6   : > { %144 = sbr.rel (%p141_p2) target bundleno = 205 (0xcd), region = 28 }
   0xb   : > { %v674_v0 = vld [vmem:[%s826_s1 + $0x38] sm:$0xff]  ;;  %v673_v3 = vld [vmem:[%s826_s1 + $0x30] sm:$0xff]  ;;  %s830_s13 = smov (!%p168_p3, %s554_s13), 1  ;;  %v672_v6 = vld [vmem:[%s826_s1 + $0x28] sm:$0xff]  ;;  %vm194_vm0 = vsmask.f32 7424 }
   0xc   : > { %v682_v1 = vld [vmem:[%s826_s1 + $0x78] sm:$0xff]  ;;  %405 = vmatpush.bf16.msra.mxu0 %v674_v0  ;;  %v681_v4 = vld [vmem:[%s826_s1 + $0x70] sm:$0xff]  ;;  %s691_s26 = smul.u32 12, %s830_s13  ;;  %v680_v7 = vld [vmem:[%s826_s1 + $0x68] sm:$0xff]  ;;  %vm208_vm1 = vcmask 1046528   ;;  %s665_s16 = sshll.u32 %s830_s13, 4 }
   0xd   : > { %v690_v2 = vld [vmem:[%s826_s1 + $0xb8] sm:$0xff]  ;;  %419 = vmatpush.bf16.msra.mxu1 %v682_v1  ;;  %v689_v5 = vld [vmem:[%s826_s1 + $0xb0] sm:$0xff]  ;;  %v688_v8 = vld [vmem:[%s826_s1 + $0xa8] sm:$0xff]  ;;  %s177_s19 = scalar_lea.vmem %s827_s2, %s665_s16  ;;  %s562_s20 = sshll.u32 %s830_s13, 1  ;;  %vm465_vm2 = vcmask 1040384  }
   0xe   : > { %433 = vmatpush.bf16.msra.mxu2 %v690_v2  ;;  %s172_s8 = scalar_lea.vmem %s825_s0, %s691_s26  ;;  %v671_v9 = vld [vmem:[%s826_s1 + $0x20] sm:$0xff]  ;;  %v670_v13 = vld [vmem:[%s826_s1 + $0x18] sm:$0xff]  ;;  %v669_v18 = vld [vmem:[%s826_s1 + $0x10] sm:$0xff]  ;;  %s181_s23 = scalar_lea.vmem %s828_s3, %s562_s20 }
   0xf   : > { %v679_v10 = vld [vmem:[%s826_s1 + $0x60] sm:$0xff]  ;;  %v184_v12 = vld [vmem:[%s172_s8 + $0x8] sm:$0x1]  ;;  %v678_v14 = vld [vmem:[%s826_s1 + $0x58] sm:$0xff] }
  0x10   : > { %406 = vmatpush.bf16.msra.mxu0 %v673_v3  ;;  %v687_v11 = vld [vmem:[%s826_s1 + $0xa0] sm:$0xff]  ;;  %v192_v16 = vunpack.c.l.b16 %v184_v12  ;;  %v686_v17 = vld [vmem:[%s826_s1 + $0x98] sm:$0xff]  ;;  %v677_v19 = vld [vmem:[%s826_s1 + $0x50] sm:$0xff] }
  0x11   : > { %420 = vmatpush.bf16.msra.mxu1 %v681_v4  ;;  %v666_v15 = vld [vmem:[%s172_s8] sm:$0xff]  ;;  %v685_v22 = vld [vmem:[%s826_s1 + $0x90] sm:$0xff]  ;;  %v668_v23 = vld [vmem:[%s826_s1 + $0x8] sm:$0xff] }
  0x12   : > { %434 = vmatpush.bf16.msra.mxu2 %v689_v5  ;;  %v193_v20 = vpack.c.b16 %v192_v16, %v192_v16  ;;  %v198_v21 = vshll.u32 %v666_v15, 16  ;;  %v676_v24 = vld [vmem:[%s826_s1 + $0x48] sm:$0xff]  ;;  %v196_v25 = vshrl.u32 %v666_v15, 16  ;;  %v667_v29 = vld [vmem:[%s826_s1] sm:$0xff]  ;;  %v209_v34 = vrot.slane %v666_v15, 1 }
  0x13   : > { %v684_v28 = vld [vmem:[%s826_s1 + $0x88] sm:$0xff]  ;;  %v675_v30 = vld [vmem:[%s826_s1 + $0x40] sm:$0xff] }
  0x14   : > { %407 = vmatpush.bf16.msra.mxu0 %v672_v6  ;;  %v200_v26 = vrot.slane %v198_v21, 1  ;;  %v203_v27 = vshll.u32 %v193_v20, 16  ;;  %v683_v33 = vld [vmem:[%s826_s1 + $0x80] sm:$0xff]  ;;  %v210_v35 = vrot.slane %v193_v20, 1 }
  0x15   : > { %421 = vmatpush.bf16.msra.mxu1 %v680_v7 }
  0x16   : > { %435 = vmatpush.bf16.msra.mxu2 %v688_v8  ;;  %v201_v31 = vor.u32 %v200_v26, %v196_v25  ;;  %v205_v32 = vrot.slane %v203_v27, 1  ;;  %v211_v37 = vsel %vm208_vm1, %v209_v34, %v210_v35 }
  0x18   : > { %408 = vmatpush.bf16.msra.mxu0 %v671_v9  ;;  %v206_v36 = vsel %vm194_vm0, %v201_v31, %v205_v32 }
  0x19   : > { %422 = vmatpush.bf16.msra.mxu1 %v679_v10 }
  0x1a   : > { %436 = vmatpush.bf16.msra.mxu2 %v687_v11 }
  0x1c   : > { %409 = vmatpush.bf16.msra.mxu0 %v670_v13 }
  0x1d   : > { %423 = vmatpush.bf16.msra.mxu1 %v678_v14 }
  0x1e   : > { %437 = vmatpush.bf16.msra.mxu2 %v686_v17 }
  0x20   : > { %410 = vmatpush.bf16.msra.mxu0 %v669_v18 }
  0x21   : > { %424 = vmatpush.bf16.msra.mxu1 %v677_v19 }
  0x22   : > { %438 = vmatpush.bf16.msra.mxu2 %v685_v22 }
  0x24   : > { %411 = vmatpush.bf16.msra.mxu0 %v668_v23 }
  0x25   : > { %425 = vmatpush.bf16.msra.mxu1 %v676_v24 }
  0x26   : > { %439 = vmatpush.bf16.msra.mxu2 %v684_v28 }
  0x28   : > { %412 = vmatpush.bf16.msra.mxu0 %v667_v29 }
  0x29   : > { %426 = vmatpush.bf16.msra.mxu1 %v675_v30 }
  0x2a   : > { %440 = vmatpush.bf16.msra.mxu2 %v683_v33 }
  0x2b   : > { %413 = vmatmul.bf16.vlgmr.msra.gmra.mxu0 %v666_v15 }
  0x2c   : > { %427 = vmatmul.bf16.vlgmr.msra.gmra.mxu1 %v206_v36 }
  0x2d   : > { %441 = vmatmul.bf16.vlgmr.msra.gmra.mxu2 %v211_v37 }
  0xa8   : > { %v414_v38 = vpop.f32.mrf.mxu0 }
  0xa9   : > { %v428_v39 = vpop.f32.mrf.mxu1 }
  0xaa   : > { %v429_v40 = vadd.f32 %v428_v39, %v414_v38 }
  0xb0   : > { %v442_v41 = vpop.f32.mrf.mxu2  ;;  %v416_v43 = vpop.f32.mrf.mxu0 }
  0xb1   : > { %v443_v42 = vadd.f32 %v442_v41, %v429_v40  ;;  %v430_v44 = vpop.f32.mrf.mxu1 }
  0xb2   : > { %v431_v45 = vadd.f32 %v430_v44, %v416_v43 }
  0xb3   : > { %447 = vst [vmem:[%s177_s19] sm:$0xff] %v443_v42  ;;  %v456_v48 = vmul.f32 %v443_v42, %v443_v42 }
  0xb8   : > { %v444_v46 = vpop.f32.mrf.mxu2 }
  0xb9   : > { %v445_v47 = vadd.f32 %v444_v46, %v431_v45 }
  0xbb   : > { %448 = vst [vmem:[%s177_s19 + $0x8] sm:$0xff] %v445_v47  ;;  %v449_v49 = vadd.f32 %v445_v47, %v443_v42  ;;  %v457_v50 = vmul.f32 %v445_v47, %v445_v47 }
  0xbd   : > { %v450_v51 = vrot.slane %v449_v49, 4  ;;  %v458_v52 = vadd.f32 %v457_v50, %v456_v48 }
  0xbf   : > { %v451_v53 = vadd.f32 %v450_v51, %v449_v49  ;;  %v459_v54 = vrot.slane %v458_v52, 4 }
  0xc1   : > { %v452_v55 = vrot.slane %v451_v53, 2  ;;  %v460_v56 = vadd.f32 %v459_v54, %v458_v52 }
  0xc3   : > { %v453_v57 = vadd.f32 %v452_v55, %v451_v53  ;;  %v461_v58 = vrot.slane %v460_v56, 2 }
  0xc5   : > { %v454_v59 = vrot.slane %v453_v57, 1  ;;  %v462_v60 = vadd.f32 %v461_v58, %v460_v56 }
  0xc7   : > { %v463_v61 = vrot.slane %v462_v60, 1  ;;  %v455_v62 = vadd.f32 %v454_v59, %v453_v57 }
  0xc9   : > { %v464_v63 = vadd.f32 %v463_v61, %v462_v60 }
  0xcb   : > { %v466_v0 = vsel %vm465_vm2, %v455_v62, %v464_v63 }
  0xcc   : > { %467 = vst [vmem:[%s181_s23] sm:$0x3] %v466_v0 }
  0xcd PF: > { %s14_s12 = sadd.s32 1, %s706_s12  }
  0xce   : > { %p11_p4 = scmp.ge.s32.totalorder %s14_s12, 4  }
  0xd0   :  { %13 = sbr.rel (!%p11_p4) target bundleno = 1 (0x1), region = 70 }

// kernel: _lambda_.3
= control target key start
LH: loop header
LB: loop body
LE: loop exit
PB: predicated region body
PF: predicated region fallthrough
CT: control target
= control target key end

     0   :  { %s269_s12 = smov 0   ;;  %s305_s0 = inlined_call_operand.vmem [shape: f32[2,16,128], index: 0, kind: input, shape index: {}]   ;;  %s306_s1 = inlined_call_operand.vmem [shape: f32[1,128], index: 1, kind: input, shape index: {}]   ;;  %s307_s2 = inlined_call_operand.vmem [shape: f32[1,128], index: 2, kind: input, shape index: {}]   ;;  %s308_s3 = inlined_call_operand.vmem [shape: f32[2,16,128], index: 3, kind: output, shape index: {}]  }
   0x1 LB: > { %s242_s13 = sadd.s32 4294967295, %s271_s12   ;;  %p246_p0 = scmp.ge.s32.totalorder %s271_s12, 1  ;;  %s271_s12 = sphi %s269_s12, %s13_s12  }
   0x2   : > { %p137_p1 = scmp.lt.s32.totalorder %s271_s12, 3 }
   0x4   : > { %p138_p2 = pnand %p246_p0, %p137_p1 }
   0x5   : > { %p161_p3 = scmp.lt.s32.totalorder (!%p138_p2), %s242_s13, 1 }
   0x6   : > { %141 = sbr.rel (%p138_p2) target bundleno = 21 (0x15), region = 32 }
   0xb   : > { %s310_s13 = smov (!%p161_p3, %s242_s13), 1  ;;  %v263_v0 = vld [vmem:[%s306_s1] ss:$0 sm:$0xff] }
   0xc   : > { %s253_s16 = sshll.u32 %s310_s13, 4  ;;  %v264_v1 = vld [vmem:[%s307_s2] ss:$0 sm:$0xff] }
   0xd   : > { %s165_s19 = scalar_lea.vmem %s305_s0, %s253_s16  ;;  %s170_s24 = scalar_lea.vmem %s308_s3, %s253_s16 }
   0xe   : > { %v171_v2 = vld [vmem:[%s165_s19] sm:$0xff]  ;;  %v172_v3 = vld [vmem:[%s165_s19 + $0x8] sm:$0xff] }
   0xf   : > { %v177_v4 = vmul.f32 %v263_v0, %v171_v2  ;;  %v178_v5 = vmul.f32 %v263_v0, %v172_v3 }
  0x11   : > { %v183_v6 = vadd.f32 %v264_v1, %v177_v4  ;;  %v184_v7 = vadd.f32 %v264_v1, %v178_v5 }
  0x13   : > { %185 = vst [vmem:[%s170_s24] sm:$0xff] %v183_v6 }
  0x14   : > { %186 = vst [vmem:[%s170_s24 + $0x8] sm:$0xff] %v184_v7 }
  0x15 PF: > { %s13_s12 = sadd.s32 1, %s271_s12  }
  0x16   : > { %p10_p4 = scmp.ge.s32.totalorder %s13_s12, 4  }
  0x18   :  { %12 = sbr.rel (!%p10_p4) target bundleno = 1 (0x1), region = 62 }

</bundles_post_ra>
